<compile_context>
chip_gen: v6e
topology: v6e:2x2x1
jax: 0.10.0
libtpu: 0.0.40
codegen_flags: <defaults>
</compile_context>

<pallas_src>
import functools

import jax
import jax.numpy as jnp
from jax.experimental import pallas as pl
from jax.experimental.pallas import tpu as pltpu

LANE = 128     # lane width (last dim)
SUBLANE = 8    # sublane width (second-to-last dim)


def _round_up(x, m):
    return ((x + m - 1) // m) * m


def _cdiv(a, b):
    return (a + b - 1) // b


def _fused_mlp_kernel(x_ref, b_ref, *rest, num_layers, dims_pad,
                      final_activation, matmul_dtype):
    """rest = (w0_ref, w1_ref, ..., o_ref). Whole network on one batch tile."""
    o_ref = rest[-1]
    w_refs = rest[:num_layers]

    h = x_ref[...]
    # Static (unrolled) layer loop: handful of layers, full LLO visibility.
    for i in range(num_layers):
        np_i = dims_pad[i + 1]
        lhs = h.astype(matmul_dtype)          # no-op on first layer if aligned
        rhs = w_refs[i][...]                  # already stored in matmul dtype
        y = jnp.dot(lhs, rhs, preferred_element_type=jnp.float32)
        b_row = b_ref[i]                      # (max_np,) f32, one load
        y = y + b_row[:np_i]                  # f32 epilogue (v5e-safe)
        if (i < num_layers - 1) or final_activation:
            y = jnp.maximum(y, 0.0)           # ReLU (activation_fn := nn.ReLU)
        h = y
    o_ref[...] = h.astype(o_ref.dtype)


def mlp_forward(x, params, final_activation=False, *, use_bf16_matmul=True,
                tile_b=256, single_buffer_weights=True):
    """Fused forward of MLP(shape, nn.ReLU, input_dim, output_dim).

    x:      (B, input_dim)
    params: list of (w, b) with w stored as (in_features, out_features), so
            x @ w matches PyTorch's x @ W.T.
    use_bf16_matmul: bf16 matmul inputs + f32 accumulation (recommended on
            v6e/v7x/v5e MXU); set False for strict f32 numerics.
    """
    B, K = x.shape
    num_layers = len(params)
    out_dim = params[-1][0].shape[1]
    out_dtype = x.dtype
    matmul_dtype = jnp.bfloat16 if use_bf16_matmul else jnp.float32

    # Lane-dense padded feature sizes at every layer boundary.
    dims = [K] + [w.shape[1] for (w, _) in params]
    dims_pad = tuple(_round_up(d, LANE) for d in dims)
    max_np = max(dims_pad[1:])

    # ---- Batch tiling ----------------------------------------------------
    if B >= tile_b:
        TILE_B = tile_b
    else:
        # Small batch: aim for >=2 grid steps so both TCs (v7x) get work.
        TILE_B = max(SUBLANE, _round_up(_cdiv(B, 2), SUBLANE))
    # Cap tile by activation VMEM pressure (TILE_B x widest_dim x f32).
    while TILE_B > SUBLANE and TILE_B * max(dims_pad) * 4 > (4 << 20):
        TILE_B //= 2
    TILE_B = max(SUBLANE, _round_up(TILE_B, SUBLANE))
    B_pad = _round_up(B, TILE_B)
    grid = (B_pad // TILE_B,)

    # ---- Input: skip re-materialization if already aligned ----------------
    if x.shape == (B_pad, dims_pad[0]):
        x_in = x                                   # pass through, no HBM copy
    else:
        x_in = (jnp.zeros((B_pad, dims_pad[0]), matmul_dtype)
                .at[:B, :K].set(x.astype(matmul_dtype)))

    # ---- Weights padded & stored in matmul dtype (cast done in wrapper) ---
    padded_weights = []
    b_stack = jnp.zeros((num_layers, max_np), jnp.float32)
    for i, (w, b) in enumerate(params):
        kin, nout = w.shape
        kp, np_ = dims_pad[i], dims_pad[i + 1]
        w_pad = (jnp.zeros((kp, np_), matmul_dtype)
                 .at[:kin, :nout].set(w.astype(matmul_dtype)))
        padded_weights.append(w_pad)
        b_stack = b_stack.at[i, :nout].set(b.astype(jnp.float32))

    # ---- VMEM budget (assume 2x buffering worst case for the limit) -------
    w_bytes = sum(w.size * w.dtype.itemsize for w in padded_weights)
    b_bytes = b_stack.size * 4
    io_bytes = TILE_B * (dims_pad[0] * x_in.dtype.itemsize
                         + dims_pad[-1] * jnp.dtype(out_dtype).itemsize)
    act_bytes = 2 * TILE_B * max(dims_pad) * 4
    need = 2 * (w_bytes + b_bytes) + 2 * io_bytes + act_bytes
    vmem_limit = int(min(128 << 20, max(32 << 20, need + (8 << 20))))

    # ---- Cost estimate (actual stored dtypes) ------------------------------
    flops = 2 * B_pad * sum(dims_pad[i] * dims_pad[i + 1]
                            for i in range(num_layers))
    bytes_accessed = (x_in.size * x_in.dtype.itemsize + w_bytes + b_bytes
                      + B_pad * dims_pad[-1] * jnp.dtype(out_dtype).itemsize)
    cost = pl.CostEstimate(flops=flops, transcendentals=0,
                           bytes_accessed=bytes_accessed)

    kernel = functools.partial(
        _fused_mlp_kernel,
        num_layers=num_layers,
        dims_pad=dims_pad,
        final_activation=final_activation,
        matmul_dtype=matmul_dtype,
    )

    def _build_in_specs(single_buffer):
        extra = {}
        if single_buffer:
            # Constant-index blocks never change -> 1 buffer is enough; halves
            # the VMEM held by weights/biases.
            extra = dict(pipeline_mode=pl.Buffered(1))
        specs = [pl.BlockSpec((TILE_B, dims_pad[0]), lambda i: (i, 0))]
        specs.append(pl.BlockSpec((num_layers, max_np),
                                  lambda i: (0, 0), **extra))
        for w in padded_weights:
            specs.append(pl.BlockSpec(w.shape, lambda i: (0, 0), **extra))
        return specs

    def _call(single_buffer):
        return pl.pallas_call(
            kernel,
            out_shape=jax.ShapeDtypeStruct((B_pad, dims_pad[-1]), out_dtype),
            grid=grid,
            in_specs=_build_in_specs(single_buffer),
            out_specs=pl.BlockSpec((TILE_B, dims_pad[-1]), lambda i: (i, 0)),
            compiler_params=pltpu.CompilerParams(
                dimension_semantics=("parallel",),   # batch axis -> megacore
                vmem_limit_bytes=vmem_limit,
            ),
            cost_estimate=cost,
        )(x_in, b_stack, *padded_weights)

    if single_buffer_weights:
        try:
            out_pad = _call(True)
        except Exception:
            # Fallback: this JAX build rejects Buffered(1); default buffering.
            out_pad = _call(False)
    else:
        out_pad = _call(False)

    # Strip batch and lane padding.
    return out_pad[:B, :out_dim]


def init_mlp_params(key, shape, input_dim, output_dim, dtype=jnp.float32):
    """Deterministic init mirroring the PyTorch module's layer shapes.

    Layers: Linear(input_dim->shape[0]), ..., Linear(shape[-1]->output_dim).
    Weights stored transposed as (in, out).
    """
    dims = [input_dim] + list(shape) + [output_dim]
    params = []
    for i in range(len(dims) - 1):
        fan_in, fan_out = dims[i], dims[i + 1]
        key, wk, bk = jax.random.split(key, 3)
        bound = 1.0 / jnp.sqrt(fan_in)
        w = jax.random.uniform(wk, (fan_in, fan_out), dtype, -bound, bound)
        b = jax.random.uniform(bk, (fan_out,), dtype, -bound, bound)
        params.append((w, b))
    return params


if __name__ == "__main__":
    # Module config: MLP(shape=(64, 64), activation_fn=nn.ReLU,
    #                    input_dim=32, output_dim=16, final_activation=False)
    batch = 8
    input_dim = 32
    hidden_shape = (64, 64)
    output_dim = 16

    key = jax.random.PRNGKey(0)
    key, xk = jax.random.split(key)
    x = jax.random.normal(xk, (batch, input_dim), dtype=jnp.float32)

    params = init_mlp_params(key, hidden_shape, input_dim, output_dim)

    # Reference in plain JAX (matches PyTorch nn.Sequential semantics).
    ref = x
    for i, (w, b) in enumerate(params):
        ref = ref @ w + b
        if i < len(params) - 1:
            ref = jnp.maximum(ref, 0.0)

    # Strict-f32 path: exact semantics check.
    out_f32 = jax.block_until_ready(
        mlp_forward(x, params, final_activation=False, use_bf16_matmul=False))
    assert out_f32.shape == (batch, output_dim)
    assert jnp.allclose(out_f32, ref, atol=1e-5, rtol=1e-5)

    # Default perf path: bf16 matmul inputs, f32 accumulation/epilogue.
    out_bf16 = jax.block_until_ready(
        mlp_forward(x, params, final_activation=False, use_bf16_matmul=True))
    assert out_bf16.shape == (batch, output_dim)
    assert jnp.allclose(out_bf16, ref, atol=5e-2, rtol=5e-2)

    print("KERNEL_OK")
</pallas_src>

<mosaic_0001>
module attributes {stable_mosaic.version = 11 : i64} {
  func.func @_fused_mlp_kernel(%arg0: i32, %arg1: memref<8x128xf32, #tpu.memory_space<vmem>>, %arg2: memref<3x128xf32, #tpu.memory_space<vmem>>, %arg3: memref<128x128xf32, #tpu.memory_space<vmem>>, %arg4: memref<128x128xf32, #tpu.memory_space<vmem>>, %arg5: memref<128x128xf32, #tpu.memory_space<vmem>>, %arg6: memref<8x128xf32, #tpu.memory_space<vmem>>) attributes {dimension_semantics = [#tpu.dimension_semantics<parallel>], iteration_bounds = array<i64: 1>, scalar_prefetch = 0 : i64, scratch_operands = 0 : i64, tpu.core_type = #tpu.core_type<tc>, window_params = [{transform_indices = @transform_0, window_bounds = array<i64: 8, 128>}, {pipeline_mode = #tpu.pipeline_mode<synchronous>, transform_indices = @transform_1, window_bounds = array<i64: 3, 128>}, {pipeline_mode = #tpu.pipeline_mode<synchronous>, transform_indices = @transform_2, window_bounds = array<i64: 128, 128>}, {pipeline_mode = #tpu.pipeline_mode<synchronous>, transform_indices = @transform_3, window_bounds = array<i64: 128, 128>}, {pipeline_mode = #tpu.pipeline_mode<synchronous>, transform_indices = @transform_4, window_bounds = array<i64: 128, 128>}, {transform_indices = @transform_5, window_bounds = array<i64: 8, 128>}]} {
    %c0 = arith.constant 0 : index
    %c0_0 = arith.constant 0 : index
    %0 = vector.load %arg1[%c0, %c0_0] : memref<8x128xf32, #tpu.memory_space<vmem>>, vector<8x128xf32>
    %c0_1 = arith.constant 0 : index
    %c0_2 = arith.constant 0 : index
    %1 = vector.load %arg3[%c0_1, %c0_2] : memref<128x128xf32, #tpu.memory_space<vmem>>, vector<128x128xf32>
    %cst = arith.constant dense<0.000000e+00> : vector<8x128xf32>
    %2 = tpu.matmul %0, %1, %cst {dimension_numbers = #tpu.dot_dimension_numbers<[1], [0], [0], [1], [0, 0, 1, 1], [], []>} : vector<8x128xf32>, vector<128x128xf32>, vector<8x128xf32> -> vector<8x128xf32>
    %c0_3 = arith.constant 0 : index
    %c0_4 = arith.constant 0 : index
    %3 = vector.load %arg2[%c0_3, %c0_4] : memref<3x128xf32, #tpu.memory_space<vmem>>, vector<1x128xf32>
    %4 = vector.shape_cast %3 : vector<1x128xf32> to vector<128xf32>
    %5 = vector.shape_cast %4 : vector<128xf32> to vector<1x128xf32>
    %6 = vector.broadcast %5 : vector<1x128xf32> to vector<8x128xf32>
    %7 = arith.addf %2, %6 : vector<8x128xf32>
    %cst_5 = arith.constant 0.000000e+00 : f32
    %8 = vector.broadcast %cst_5 : f32 to vector<8x128xf32>
    %9 = arith.maximumf %7, %8 : vector<8x128xf32>
    %c0_6 = arith.constant 0 : index
    %c0_7 = arith.constant 0 : index
    %10 = vector.load %arg4[%c0_6, %c0_7] : memref<128x128xf32, #tpu.memory_space<vmem>>, vector<128x128xf32>
    %cst_8 = arith.constant dense<0.000000e+00> : vector<8x128xf32>
    %11 = tpu.matmul %9, %10, %cst_8 {dimension_numbers = #tpu.dot_dimension_numbers<[1], [0], [0], [1], [0, 0, 1, 1], [], []>} : vector<8x128xf32>, vector<128x128xf32>, vector<8x128xf32> -> vector<8x128xf32>
    %c1 = arith.constant 1 : index
    %c0_9 = arith.constant 0 : index
    %12 = vector.load %arg2[%c1, %c0_9] : memref<3x128xf32, #tpu.memory_space<vmem>>, vector<1x128xf32>
    %13 = vector.shape_cast %12 : vector<1x128xf32> to vector<128xf32>
    %14 = vector.shape_cast %13 : vector<128xf32> to vector<1x128xf32>
    %15 = vector.broadcast %14 : vector<1x128xf32> to vector<8x128xf32>
    %16 = arith.addf %11, %15 : vector<8x128xf32>
    %cst_10 = arith.constant 0.000000e+00 : f32
    %17 = vector.broadcast %cst_10 : f32 to vector<8x128xf32>
    %18 = arith.maximumf %16, %17 : vector<8x128xf32>
    %c0_11 = arith.constant 0 : index
    %c0_12 = arith.constant 0 : index
    %19 = vector.load %arg5[%c0_11, %c0_12] : memref<128x128xf32, #tpu.memory_space<vmem>>, vector<128x128xf32>
    %cst_13 = arith.constant dense<0.000000e+00> : vector<8x128xf32>
    %20 = tpu.matmul %18, %19, %cst_13 {dimension_numbers = #tpu.dot_dimension_numbers<[1], [0], [0], [1], [0, 0, 1, 1], [], []>} : vector<8x128xf32>, vector<128x128xf32>, vector<8x128xf32> -> vector<8x128xf32>
    %c2 = arith.constant 2 : index
    %c0_14 = arith.constant 0 : index
    %21 = vector.load %arg2[%c2, %c0_14] : memref<3x128xf32, #tpu.memory_space<vmem>>, vector<1x128xf32>
    %22 = vector.shape_cast %21 : vector<1x128xf32> to vector<128xf32>
    %23 = vector.shape_cast %22 : vector<128xf32> to vector<1x128xf32>
    %24 = vector.broadcast %23 : vector<1x128xf32> to vector<8x128xf32>
    %25 = arith.addf %20, %24 : vector<8x128xf32>
    %c0_15 = arith.constant 0 : index
    %c0_16 = arith.constant 0 : index
    %26 = vector.load %arg6[%c0_15, %c0_16] : memref<8x128xf32, #tpu.memory_space<vmem>>, vector<8x128xf32>
    tpu.vector_store %arg6[%c0_15, %c0_16], %25 {strides = array<i32>} : memref<8x128xf32, #tpu.memory_space<vmem>>, vector<8x128xf32>,
    return
  }
  func.func @transform_0(%arg0: i32) -> (i32, i32) {
    %c0_i32 = arith.constant 0 : i32
    %c0_i32_0 = arith.constant 0 : i32
    return %arg0, %c0_i32 : i32, i32
  }
  func.func @transform_1(%arg0: i32) -> (i32, i32) {
    %c0_i32 = arith.constant 0 : i32
    %c0_i32_0 = arith.constant 0 : i32
    %c0_i32_1 = arith.constant 0 : i32
    return %c0_i32, %c0_i32_0 : i32, i32
  }
  func.func @transform_2(%arg0: i32) -> (i32, i32) {
    %c0_i32 = arith.constant 0 : i32
    %c0_i32_0 = arith.constant 0 : i32
    %c0_i32_1 = arith.constant 0 : i32
    return %c0_i32, %c0_i32_0 : i32, i32
  }
  func.func @transform_3(%arg0: i32) -> (i32, i32) {
    %c0_i32 = arith.constant 0 : i32
    %c0_i32_0 = arith.constant 0 : i32
    %c0_i32_1 = arith.constant 0 : i32
    return %c0_i32, %c0_i32_0 : i32, i32
  }
  func.func @transform_4(%arg0: i32) -> (i32, i32) {
    %c0_i32 = arith.constant 0 : i32
    %c0_i32_0 = arith.constant 0 : i32
    %c0_i32_1 = arith.constant 0 : i32
    return %c0_i32, %c0_i32_0 : i32, i32
  }
  func.func @transform_5(%arg0: i32) -> (i32, i32) {
    %c0_i32 = arith.constant 0 : i32
    %c0_i32_0 = arith.constant 0 : i32
    return %arg0, %c0_i32 : i32, i32
  }
}

module attributes {stable_mosaic.version = 11 : i64} {
  func.func @_fused_mlp_kernel(%arg0: i32, %arg1: memref<8x128xf32, #tpu.memory_space<vmem>>, %arg2: memref<3x128xf32, #tpu.memory_space<vmem>>, %arg3: memref<128x128xf32, #tpu.memory_space<vmem>>, %arg4: memref<128x128xf32, #tpu.memory_space<vmem>>, %arg5: memref<128x128xf32, #tpu.memory_space<vmem>>, %arg6: memref<8x128xf32, #tpu.memory_space<vmem>>) attributes {dimension_semantics = [#tpu.dimension_semantics<parallel>], iteration_bounds = array<i64: 1>, scalar_prefetch = 0 : i64, scratch_operands = 0 : i64, tpu.core_type = #tpu.core_type<tc>, window_params = [{transform_indices = @transform_0, window_bounds = array<i64: 8, 128>}, {pipeline_mode = #tpu.pipeline_mode<synchronous>, transform_indices = @transform_1, window_bounds = array<i64: 3, 128>}, {pipeline_mode = #tpu.pipeline_mode<synchronous>, transform_indices = @transform_2, window_bounds = array<i64: 128, 128>}, {pipeline_mode = #tpu.pipeline_mode<synchronous>, transform_indices = @transform_3, window_bounds = array<i64: 128, 128>}, {pipeline_mode = #tpu.pipeline_mode<synchronous>, transform_indices = @transform_4, window_bounds = array<i64: 128, 128>}, {transform_indices = @transform_5, window_bounds = array<i64: 8, 128>}]} {
    %c0 = arith.constant 0 : index
    %c0_0 = arith.constant 0 : index
    %0 = vector.load %arg1[%c0, %c0_0] : memref<8x128xf32, #tpu.memory_space<vmem>>, vector<8x128xf32>
    %c0_1 = arith.constant 0 : index
    %c0_2 = arith.constant 0 : index
    %1 = vector.load %arg3[%c0_1, %c0_2] : memref<128x128xf32, #tpu.memory_space<vmem>>, vector<128x128xf32>
    %cst = arith.constant dense<0.000000e+00> : vector<8x128xf32>
    %2 = tpu.matmul %0, %1, %cst {dimension_numbers = #tpu.dot_dimension_numbers<[1], [0], [0], [1], [0, 0, 1, 1], [], []>} : vector<8x128xf32>, vector<128x128xf32>, vector<8x128xf32> -> vector<8x128xf32>
    %c0_3 = arith.constant 0 : index
    %c0_4 = arith.constant 0 : index
    %3 = vector.load %arg2[%c0_3, %c0_4] : memref<3x128xf32, #tpu.memory_space<vmem>>, vector<1x128xf32>
    %4 = vector.shape_cast %3 : vector<1x128xf32> to vector<128xf32>
    %5 = vector.shape_cast %4 : vector<128xf32> to vector<1x128xf32>
    %6 = vector.broadcast %5 : vector<1x128xf32> to vector<8x128xf32>
    %7 = arith.addf %2, %6 : vector<8x128xf32>
    %cst_5 = arith.constant 0.000000e+00 : f32
    %8 = vector.broadcast %cst_5 : f32 to vector<8x128xf32>
    %9 = arith.maximumf %7, %8 : vector<8x128xf32>
    %c0_6 = arith.constant 0 : index
    %c0_7 = arith.constant 0 : index
    %10 = vector.load %arg4[%c0_6, %c0_7] : memref<128x128xf32, #tpu.memory_space<vmem>>, vector<128x128xf32>
    %cst_8 = arith.constant dense<0.000000e+00> : vector<8x128xf32>
    %11 = tpu.matmul %9, %10, %cst_8 {dimension_numbers = #tpu.dot_dimension_numbers<[1], [0], [0], [1], [0, 0, 1, 1], [], []>} : vector<8x128xf32>, vector<128x128xf32>, vector<8x128xf32> -> vector<8x128xf32>
    %c1 = arith.constant 1 : index
    %c0_9 = arith.constant 0 : index
    %12 = vector.load %arg2[%c1, %c0_9] : memref<3x128xf32, #tpu.memory_space<vmem>>, vector<1x128xf32>
    %13 = vector.shape_cast %12 : vector<1x128xf32> to vector<128xf32>
    %14 = vector.shape_cast %13 : vector<128xf32> to vector<1x128xf32>
    %15 = vector.broadcast %14 : vector<1x128xf32> to vector<8x128xf32>
    %16 = arith.addf %11, %15 : vector<8x128xf32>
    %cst_10 = arith.constant 0.000000e+00 : f32
    %17 = vector.broadcast %cst_10 : f32 to vector<8x128xf32>
    %18 = arith.maximumf %16, %17 : vector<8x128xf32>
    %c0_11 = arith.constant 0 : index
    %c0_12 = arith.constant 0 : index
    %19 = vector.load %arg5[%c0_11, %c0_12] : memref<128x128xf32, #tpu.memory_space<vmem>>, vector<128x128xf32>
    %cst_13 = arith.constant dense<0.000000e+00> : vector<8x128xf32>
    %20 = tpu.matmul %18, %19, %cst_13 {dimension_numbers = #tpu.dot_dimension_numbers<[1], [0], [0], [1], [0, 0, 1, 1], [], []>} : vector<8x128xf32>, vector<128x128xf32>, vector<8x128xf32> -> vector<8x128xf32>
    %c2 = arith.constant 2 : index
    %c0_14 = arith.constant 0 : index
    %21 = vector.load %arg2[%c2, %c0_14] : memref<3x128xf32, #tpu.memory_space<vmem>>, vector<1x128xf32>
    %22 = vector.shape_cast %21 : vector<1x128xf32> to vector<128xf32>
    %23 = vector.shape_cast %22 : vector<128xf32> to vector<1x128xf32>
    %24 = vector.broadcast %23 : vector<1x128xf32> to vector<8x128xf32>
    %25 = arith.addf %20, %24 : vector<8x128xf32>
    %c0_15 = arith.constant 0 : index
    %c0_16 = arith.constant 0 : index
    %26 = vector.load %arg6[%c0_15, %c0_16] : memref<8x128xf32, #tpu.memory_space<vmem>>, vector<8x128xf32>
    tpu.vector_store %arg6[%c0_15, %c0_16], %25 {strides = array<i32>} : memref<8x128xf32, #tpu.memory_space<vmem>>, vector<8x128xf32>,
    return
  }
  func.func @transform_0(%arg0: i32) -> (i32, i32) {
    %c0_i32 = arith.constant 0 : i32
    %c0_i32_0 = arith.constant 0 : i32
    return %arg0, %c0_i32 : i32, i32
  }
  func.func @transform_1(%arg0: i32) -> (i32, i32) {
    %c0_i32 = arith.constant 0 : i32
    %c0_i32_0 = arith.constant 0 : i32
    %c0_i32_1 = arith.constant 0 : i32
    return %c0_i32, %c0_i32_0 : i32, i32
  }
  func.func @transform_2(%arg0: i32) -> (i32, i32) {
    %c0_i32 = arith.constant 0 : i32
    %c0_i32_0 = arith.constant 0 : i32
    %c0_i32_1 = arith.constant 0 : i32
    return %c0_i32, %c0_i32_0 : i32, i32
  }
  func.func @transform_3(%arg0: i32) -> (i32, i32) {
    %c0_i32 = arith.constant 0 : i32
    %c0_i32_0 = arith.constant 0 : i32
    %c0_i32_1 = arith.constant 0 : i32
    return %c0_i32, %c0_i32_0 : i32, i32
  }
  func.func @transform_4(%arg0: i32) -> (i32, i32) {
    %c0_i32 = arith.constant 0 : i32
    %c0_i32_0 = arith.constant 0 : i32
    %c0_i32_1 = arith.constant 0 : i32
    return %c0_i32, %c0_i32_0 : i32, i32
  }
  func.func @transform_5(%arg0: i32) -> (i32, i32) {
    %c0_i32 = arith.constant 0 : i32
    %c0_i32_0 = arith.constant 0 : i32
    return %arg0, %c0_i32 : i32, i32
  }
}

</mosaic_0001>

<bundles_post_ra>
// kernel: tpu_custom_call.1
= control target key start
LH: loop header
LB: loop body
LE: loop exit
PB: predicated region body
PF: predicated region fallthrough
CT: control target
= control target key end

     0   :  { %10 = vsyncpa [#allocation3], 0  ;;  %s797_s0 = inlined_call_operand.hbm [shape: f32[8,128], index: 0, kind: input, shape index: {}]   ;;  %s798_s1 = inlined_call_operand.hbm [shape: f32[3,128], index: 1, kind: input, shape index: {}]   ;;  %s799_s2 = inlined_call_operand.hbm [shape: f32[128,128], index: 2, kind: input, shape index: {}]   ;;  %s800_s3 = inlined_call_operand.hbm [shape: f32[128,128], index: 3, kind: input, shape index: {}]   ;;  %s801_s4 = inlined_call_operand.hbm [shape: f32[128,128], index: 4, kind: input, shape index: {}]   ;;  %s802_s5 = inlined_call_operand.hbm [shape: f32[8,128], index: 5, kind: output, shape index: {}]  }
   0x1   :  { %11 = vsyncpa [#allocation6], 0 }
   0x2   :  { %12 = vsyncpa [#allocation9], 0 }
   0x3   :  { %13 = vsyncpa [#allocation4], 0  ;;  %s676_s18 = smov [#allocation5]  }
   0x4   :  { %s30_s19 = sshll.u32 %s676_s18, 4  ;;  %s31_s19 = int_to_ptr.vmem [resolvable:$true] %s30_s19 }
   0x5   :  { %s556_s20 = scalar_lea.vmem %s31_s19, 64  ;;  %p561_p1 = scmp.lt.s32.totalorder %s31_s19, %s31_s19 }
   0x6   :  { %p557_p0 = scmp.ne.s32.totalorder %s31_s19, %s556_s20  ;;  %p562_p2 = scmp.lt.s32.totalorder %s556_s20, %s556_s20 }
   0x8   :  { %p563_p3 = por %p562_p2, %p561_p1 }
   0xa   :  { %p564_p4 = pnand %p563_p3, %p557_p0 }
   0xc   :  { %567 = shalt.err (!%p564_p4)
}
   0xd   :  { %33 = dma.hbm_to_vmem [thread:$0]  %s798_s1, 64, %s31_s19, [#allocation6]  }
   0xe   :  { %s677_s23 = smov [#allocation8]   ;;  %s678_s25 = smov [#allocation2]  }
   0xf   :  { %s51_s24 = sshll.u32 %s677_s23, 4  ;;  %s20_s26 = sshll.u32 %s678_s25, 4  ;;  %s52_s24 = int_to_ptr.vmem [resolvable:$true] %s51_s24  ;;  %s21_s26 = int_to_ptr.vmem [resolvable:$true] %s20_s26 }
  0x10   :  { %s576_s27 = scalar_lea.vmem %s52_s24, 2048  ;;  %p581_p6 = scmp.lt.s32.totalorder %s52_s24, %s52_s24 }
  0x11   :  { %p577_p5 = scmp.ne.s32.totalorder %s52_s24, %s576_s27  ;;  %p582_p7 = scmp.lt.s32.totalorder %s576_s27, %s576_s27 }
  0x13   :  { %p583_p8 = por %p582_p7, %p581_p6 }
  0x15   :  { %p584_p9 = pnand %p583_p8, %p577_p5 }
  0x17   :  { %587 = shalt.err (!%p584_p9)
}
  0x18   :  { %s679_s28 = smov 128   ;;  %s680_s29 = smov 8  }
  0x19   :  { %57 = dma.hbm_to_vmem [thread:$0]  %s800_s3, 2048, %s52_s24, [#allocation9], %s679_s28, %s679_s28, %s680_s29  }
  0x1a   :  { %s596_s1 = scalar_lea.vmem %s21_s26, 128  ;;  %p601_p11 = scmp.lt.s32.totalorder %s21_s26, %s21_s26 }
  0x1b   :  { %p597_p10 = scmp.ne.s32.totalorder %s21_s26, %s596_s1  ;;  %p602_p12 = scmp.lt.s32.totalorder %s596_s1, %s596_s1 }
  0x1d   :  { %p603_p13 = por %p602_p12, %p601_p11 }
  0x1f   :  { %p604_p0 = pnand %p603_p13, %p597_p10 }
  0x21   :  { %607 = shalt.err (!%p604_p0)
}
  0x22   :  { %23 = dma.hbm_to_vmem [thread:$0]  %s797_s0, 128, %s21_s26, [#allocation3]  }
  0x23   :  { %s681_s9 = smov [#allocation7]   ;;  %s682_s11 = smov [#allocation10]  }
  0x24   :  { %s39_s10 = sshll.u32 %s681_s9, 4  ;;  %s63_s12 = sshll.u32 %s682_s11, 4  ;;  %s40_s10 = int_to_ptr.vmem [resolvable:$true] %s39_s10  ;;  %s64_s12 = int_to_ptr.vmem [resolvable:$true] %s63_s12 }
  0x25   :  { %s616_s13 = scalar_lea.vmem %s40_s10, 2048  ;;  %p621_p2 = scmp.lt.s32.totalorder %s40_s10, %s40_s10 }
  0x26   :  { %p617_p1 = scmp.ne.s32.totalorder %s40_s10, %s616_s13  ;;  %p622_p3 = scmp.lt.s32.totalorder %s616_s13, %s616_s13 }
  0x28   :  { %p623_p4 = por %p622_p3, %p621_p2 }
  0x2a   :  { %p624_p5 = pnand %p623_p4, %p617_p1 }
  0x2c   :  { %627 = shalt.err (!%p624_p5)
}
  0x2d   :  { %45 = dma.hbm_to_vmem [thread:$0]  %s799_s2, 2048, %s40_s10, [#allocation6], %s679_s28, %s679_s28, %s680_s29  }
  0x2e   :  { %s636_s0 = scalar_lea.vmem %s64_s12, 2048  ;;  %p641_p7 = scmp.lt.s32.totalorder %s64_s12, %s64_s12 }
  0x2f   :  { %p637_p6 = scmp.ne.s32.totalorder %s64_s12, %s636_s0  ;;  %p642_p8 = scmp.lt.s32.totalorder %s636_s0, %s636_s0 }
  0x31   :  { %p643_p9 = por %p642_p8, %p641_p7 }
  0x33   :  { %p644_p10 = pnand %p643_p9, %p637_p6 }
  0x35   :  { %647 = shalt.err (!%p644_p10)
}
  0x36   :  { %69 = dma.hbm_to_vmem [thread:$0]  %s801_s4, 2048, %s64_s12, [#allocation9], %s679_s28, %s679_s28, %s680_s29  }
  0x37   :  { %668 = dma.done.wait [#allocation3], 128  }
  0x38   :  { %669 = vsyncadd [#allocation3], 4294967168 }
  0x39   :  { %670 = dma.done.wait [#allocation6], 2112  }
  0x3a   :  { %671 = vsyncadd [#allocation6], 4294965184 }
  0x3b   :  { %672 = dma.done.wait [#allocation9], 4096  }
  0x3c   :  { %673 = vsyncadd [#allocation9], 4294963200  ;;  %v683_v0 = vmov 0.0   ;;  %vm684_vm0 = vmmov 0   ;;  %v101_v1 = vld [vmem:[#allocation7 + $0x78] sm:$0xff]  ;;  %v100_v2 = vld [vmem:[#allocation7 + $0x70] sm:$0xff] }
  0x3d   :  { %433 = vmatprep.subr.mxu0 %v683_v0  ;;  %465 = vmatprep.mubr.msk.f32.mxu0 %vm684_vm0, %v683_v0  ;;  %v99_v3 = vld [vmem:[#allocation7 + $0x68] sm:$0xff]  ;;  %v98_v4 = vld [vmem:[#allocation7 + $0x60] sm:$0xff]  ;;  %v193_v5 = vld [vmem:[#allocation8 + $0x78] sm:$0xff]  ;;  %s685_s2 = smov [#allocation11]  }
  0x3e   :  { %468 = vmatprep.subr.mxu1 %v683_v0  ;;  %500 = vmatprep.mubr.msk.f32.mxu1 %vm684_vm0, %v683_v0  ;;  %v97_v6 = vld [vmem:[#allocation7 + $0x58] sm:$0xff]  ;;  %v192_v7 = vld [vmem:[#allocation8 + $0x70] sm:$0xff]  ;;  %v191_v8 = vld [vmem:[#allocation8 + $0x68] sm:$0xff]  ;;  %s368_s4 = sshll.u32 %s685_s2, 4  ;;  %s369_s4 = int_to_ptr.vmem [resolvable:$true] %s368_s4 }
  0x3f   :  { %434 = vmatpush3.msra.mxu0 %v101_v1  ;;  %469 = vmatpush3.msra.mxu1 %v193_v5  ;;  %v96_v9 = vld [vmem:[#allocation7 + $0x50] sm:$0xff]  ;;  %v190_v10 = vld [vmem:[#allocation8 + $0x60] sm:$0xff]  ;;  %v95_v11 = vld [vmem:[#allocation7 + $0x48] sm:$0xff]  ;;  %s648_s17 = scalar_lea.vmem %s369_s4, 128  ;;  %p653_p12 = scmp.lt.s32.totalorder %s369_s4, %s369_s4 }
  0x40   :  { %435 = vmatprep.subr.mxu0 %v683_v0  ;;  %470 = vmatprep.subr.mxu1 %v683_v0  ;;  %v189_v12 = vld [vmem:[#allocation8 + $0x58] sm:$0xff]  ;;  %v94_v13 = vld [vmem:[#allocation7 + $0x40] sm:$0xff]  ;;  %v188_v14 = vld [vmem:[#allocation8 + $0x50] sm:$0xff]  ;;  %p649_p11 = scmp.ne.s32.totalorder %s369_s4, %s648_s17  ;;  %p654_p13 = scmp.lt.s32.totalorder %s648_s17, %s648_s17 }
  0x41   :  { %436 = vmatpush3.msra.mxu0 %v100_v2  ;;  %471 = vmatpush3.msra.mxu1 %v192_v7  ;;  %v93_v15 = vld [vmem:[#allocation7 + $0x38] sm:$0xff]  ;;  %v187_v16 = vld [vmem:[#allocation8 + $0x48] sm:$0xff]  ;;  %v92_v17 = vld [vmem:[#allocation7 + $0x30] sm:$0xff] }
  0x42   :  { %437 = vmatprep.subr.mxu0 %v683_v0  ;;  %472 = vmatprep.subr.mxu1 %v683_v0  ;;  %v186_v18 = vld [vmem:[#allocation8 + $0x40] sm:$0xff]  ;;  %v91_v19 = vld [vmem:[#allocation7 + $0x28] sm:$0xff]  ;;  %v185_v20 = vld [vmem:[#allocation8 + $0x38] sm:$0xff]  ;;  %p655_p0 = por %p654_p13, %p653_p12 }
  0x43   :  { %438 = vmatpush3.msra.mxu0 %v99_v3  ;;  %473 = vmatpush3.msra.mxu1 %v191_v8  ;;  %v90_v21 = vld [vmem:[#allocation7 + $0x20] sm:$0xff]  ;;  %v184_v22 = vld [vmem:[#allocation8 + $0x30] sm:$0xff]  ;;  %v89_v23 = vld [vmem:[#allocation7 + $0x18] sm:$0xff] }
  0x44   :  { %439 = vmatprep.subr.mxu0 %v683_v0  ;;  %474 = vmatprep.subr.mxu1 %v683_v0  ;;  %v183_v24 = vld [vmem:[#allocation8 + $0x28] sm:$0xff]  ;;  %v88_v25 = vld [vmem:[#allocation7 + $0x10] sm:$0xff]  ;;  %v182_v26 = vld [vmem:[#allocation8 + $0x20] sm:$0xff]  ;;  %p656_p1 = pnand %p655_p0, %p649_p11 }
  0x45   :  { %440 = vmatpush3.msra.mxu0 %v98_v4  ;;  %475 = vmatpush3.msra.mxu1 %v190_v10  ;;  %v87_v27 = vld [vmem:[#allocation7 + $0x8] sm:$0xff]  ;;  %v181_v28 = vld [vmem:[#allocation8 + $0x18] sm:$0xff]  ;;  %v86_v29 = vld [vmem:[#allocation7] sm:$0xff] }
  0x46   :  { %441 = vmatprep.subr.mxu0 %v683_v0  ;;  %476 = vmatprep.subr.mxu1 %v683_v0  ;;  %v85_v30 = vld [vmem:[#allocation2] sm:$0xff]  ;;  %v179_v32 = vld [vmem:[#allocation8 + $0x8] sm:$0xff]  ;;  %v178_v33 = vld [vmem:[#allocation8] sm:$0xff] }
  0x47   :  { %442 = vmatpush3.msra.mxu0 %v97_v6  ;;  %477 = vmatpush3.msra.mxu1 %v189_v12  ;;  %v180_v31 = vld [vmem:[#allocation8 + $0x10] sm:$0xff]  ;;  %v285_v34 = vld [vmem:[#allocation10 + $0x78] sm:$0xff]  ;;  %v283_v36 = vld [vmem:[#allocation10 + $0x68] sm:$0xff] }
  0x48   :  { %443 = vmatprep.subr.mxu0 %v683_v0  ;;  %478 = vmatprep.subr.mxu1 %v683_v0  ;;  %v284_v35 = vld [vmem:[#allocation10 + $0x70] sm:$0xff]  ;;  %v282_v37 = vld [vmem:[#allocation10 + $0x60] sm:$0xff]  ;;  %v281_v38 = vld [vmem:[#allocation10 + $0x58] sm:$0xff] }
  0x49   :  { %444 = vmatpush3.msra.mxu0 %v96_v9  ;;  %479 = vmatpush3.msra.mxu1 %v188_v14  ;;  %v280_v39 = vld [vmem:[#allocation10 + $0x50] sm:$0xff]  ;;  %v279_v40 = vld [vmem:[#allocation10 + $0x48] sm:$0xff]  ;;  %v278_v41 = vld [vmem:[#allocation10 + $0x40] sm:$0xff] }
  0x4a   :  { %445 = vmatprep.subr.mxu0 %v683_v0  ;;  %480 = vmatprep.subr.mxu1 %v683_v0  ;;  %v277_v42 = vld [vmem:[#allocation10 + $0x38] sm:$0xff]  ;;  %v276_v43 = vld [vmem:[#allocation10 + $0x30] sm:$0xff]  ;;  %v275_v44 = vld [vmem:[#allocation10 + $0x28] sm:$0xff] }
  0x4b   :  { %446 = vmatpush3.msra.mxu0 %v95_v11  ;;  %481 = vmatpush3.msra.mxu1 %v187_v16  ;;  %v274_v45 = vld [vmem:[#allocation10 + $0x20] sm:$0xff]  ;;  %v273_v46 = vld [vmem:[#allocation10 + $0x18] sm:$0xff]  ;;  %v272_v52 = vld [vmem:[#allocation10 + $0x10] sm:$0xff] }
  0x4c   :  { %447 = vmatprep.subr.mxu0 %v683_v0  ;;  %482 = vmatprep.subr.mxu1 %v683_v0  ;;  %v379_v47 = vld [vmem:[#allocation5] ss:$0 sm:$0xff]  ;;  %v271_v53 = vld [vmem:[#allocation10 + $0x8] sm:$0xff]  ;;  %v270_v54 = vld [vmem:[#allocation10] sm:$0xff] }
  0x4d   :  { %448 = vmatpush3.msra.mxu0 %v94_v13  ;;  %483 = vmatpush3.msra.mxu1 %v186_v18  ;;  %v380_v55 = vld [vmem:[#allocation5 + $0x1] ss:$0 sm:$0xff]  ;;  %v381_v60 = vld [vmem:[#allocation5 + $0x2] ss:$0 sm:$0xff] }
  0x4e   :  { %449 = vmatprep.subr.mxu0 %v683_v0  ;;  %484 = vmatprep.subr.mxu1 %v683_v0 }
  0x4f   :  { %450 = vmatpush3.msra.mxu0 %v93_v15  ;;  %485 = vmatpush3.msra.mxu1 %v185_v20 }
  0x50   :  { %451 = vmatprep.subr.mxu0 %v683_v0  ;;  %486 = vmatprep.subr.mxu1 %v683_v0 }
  0x51   :  { %452 = vmatpush3.msra.mxu0 %v92_v17  ;;  %487 = vmatpush3.msra.mxu1 %v184_v22 }
  0x52   :  { %453 = vmatprep.subr.mxu0 %v683_v0  ;;  %488 = vmatprep.subr.mxu1 %v683_v0 }
  0x53   :  { %454 = vmatpush3.msra.mxu0 %v91_v19  ;;  %489 = vmatpush3.msra.mxu1 %v183_v24 }
  0x54   :  { %455 = vmatprep.subr.mxu0 %v683_v0  ;;  %490 = vmatprep.subr.mxu1 %v683_v0 }
  0x55   :  { %456 = vmatpush3.msra.mxu0 %v90_v21  ;;  %491 = vmatpush3.msra.mxu1 %v182_v26 }
  0x56   :  { %457 = vmatprep.subr.mxu0 %v683_v0  ;;  %492 = vmatprep.subr.mxu1 %v683_v0 }
  0x57   :  { %458 = vmatpush3.msra.mxu0 %v89_v23  ;;  %493 = vmatpush3.msra.mxu1 %v181_v28 }
  0x58   :  { %459 = vmatprep.subr.mxu0 %v683_v0  ;;  %494 = vmatprep.subr.mxu1 %v683_v0 }
  0x59   :  { %460 = vmatpush3.msra.mxu0 %v88_v25  ;;  %495 = vmatpush3.msra.mxu1 %v180_v31 }
  0x5a   :  { %461 = vmatprep.subr.mxu0 %v683_v0  ;;  %496 = vmatprep.subr.mxu1 %v683_v0 }
  0x5b   :  { %462 = vmatpush3.msra.mxu0 %v87_v27  ;;  %497 = vmatpush3.msra.mxu1 %v179_v32 }
  0x5c   :  { %463 = vmatprep.subr.mxu0 %v683_v0  ;;  %498 = vmatprep.subr.mxu1 %v683_v0 }
  0x5d   :  { %464 = vmatpush3.msra.mxu0 %v86_v29  ;;  %499 = vmatpush3.msra.mxu1 %v178_v33 }
  0x5e   :  { %466 = vmatmul.mubr.f32.vlgmr.msra.gmra.mxu0 %v85_v30  ;;  %503 = vmatprep.subr.mxu0 %v683_v0 }
  0x5f   :  { %535 = vmatprep.mubr.msk.f32.mxu0 %vm684_vm0, %v683_v0  ;;  %504 = vmatpush3.msra.mxu0 %v285_v34 }
  0x60   :  { %505 = vmatprep.subr.mxu0 %v683_v0 }
  0x61   :  { %506 = vmatpush3.msra.mxu0 %v284_v35 }
  0x62   :  { %507 = vmatprep.subr.mxu0 %v683_v0 }
  0x63   :  { %508 = vmatpush3.msra.mxu0 %v283_v36 }
  0x64   :  { %509 = vmatprep.subr.mxu0 %v683_v0 }
  0x65   :  { %510 = vmatpush3.msra.mxu0 %v282_v37 }
  0x66   :  { %511 = vmatprep.subr.mxu0 %v683_v0 }
  0x67   :  { %512 = vmatpush3.msra.mxu0 %v281_v38 }
  0x68   :  { %513 = vmatprep.subr.mxu0 %v683_v0 }
  0x69   :  { %514 = vmatpush3.msra.mxu0 %v280_v39 }
  0x6a   :  { %515 = vmatprep.subr.mxu0 %v683_v0 }
  0x6b   :  { %516 = vmatpush3.msra.mxu0 %v279_v40 }
  0x6c   :  { %517 = vmatprep.subr.mxu0 %v683_v0 }
  0x6d   :  { %518 = vmatpush3.msra.mxu0 %v278_v41 }
  0x6e   :  { %519 = vmatprep.subr.mxu0 %v683_v0 }
  0x6f   :  { %520 = vmatpush3.msra.mxu0 %v277_v42 }
  0x70   :  { %521 = vmatprep.subr.mxu0 %v683_v0 }
  0x71   :  { %522 = vmatpush3.msra.mxu0 %v276_v43 }
  0x72   :  { %523 = vmatprep.subr.mxu0 %v683_v0 }
  0x73   :  { %524 = vmatpush3.msra.mxu0 %v275_v44 }
  0x74   :  { %525 = vmatprep.subr.mxu0 %v683_v0 }
  0x75   :  { %526 = vmatpush3.msra.mxu0 %v274_v45 }
  0x76   :  { %527 = vmatprep.subr.mxu0 %v683_v0 }
  0x77   :  { %528 = vmatpush3.msra.mxu0 %v273_v46 }
  0x78   :  { %529 = vmatprep.subr.mxu0 %v683_v0 }
  0x79   :  { %530 = vmatpush3.msra.mxu0 %v272_v52 }
  0x7a   :  { %531 = vmatprep.subr.mxu0 %v683_v0 }
  0x7b   :  { %532 = vmatpush3.msra.mxu0 %v271_v53 }
  0x7c   :  { %533 = vmatprep.subr.mxu0 %v683_v0 }
  0x7d   :  { %534 = vmatpush3.msra.mxu0 %v270_v54 }
 0x11e   :  { %v173_v48 = vpop.f32.mrf.mxu0 }
 0x11f   :  { %v174_v49 = vadd.f32 %v379_v47, %v173_v48 }
 0x120   :  { %v467_v50 = vpop.f32.mrf.mxu0 }
 0x121   :  { %v177_v51 = vmax.f32 %v174_v49, 0.0 }
 0x123   :  { %501 = vmatmul.mubr.f32.vlgmr.msra.gmra.mxu1 %v177_v51 }
 0x1e3   :  { %v265_v56 = vpop.f32.mrf.mxu1 }
 0x1e4   :  { %v266_v57 = vadd.f32 %v380_v55, %v265_v56 }
 0x1e5   :  { %v502_v58 = vpop.f32.mrf.mxu1 }
 0x1e6   :  { %v269_v59 = vmax.f32 %v266_v57, 0.0 }
 0x1e8   :  { %536 = vmatmul.mubr.f32.vlgmr.msra.gmra.mxu0 %v269_v59 }
 0x2a8   :  { %v357_v61 = vpop.f32.mrf.mxu0 }
 0x2a9   :  { %v358_v62 = vadd.f32 %v381_v60, %v357_v61 }
 0x2aa   :  { %v537_v63 = vpop.f32.mrf.mxu0 }
 0x2ab   :  { %361 = vst [vmem:[#allocation11] sm:$0xff] %v358_v62 }
 0x2ac   :  { %659 = shalt.err (!%p656_p1)
}
 0x2ad   :  { %371 = dma.vmem_to_hbm [thread:$0]  %s369_s4, 128, %s802_s5, [#allocation4]  }
 0x2ae   :  { %674 = dma.done.wait [#allocation4], 128  }
 0x2af   :  { %675 = vsyncadd [#allocation4], 4294967168 }
 0x2b0   :  { %375 = vsyncpa [#allocation3], 1 }
 0x2b1   :  { %376 = vsyncpa [#allocation6], 1 }
 0x2b2   :  { %377 = vsyncpa [#allocation9], 1 }
 0x2b3   :  { %378 = vsyncpa [#allocation4], 1 }

// kernel: tpu_custom_call.1
= control target key start
LH: loop header
LB: loop body
LE: loop exit
PB: predicated region body
PF: predicated region fallthrough
CT: control target
= control target key end

     0   :  { %10 = vsyncpa [#allocation3], 0  ;;  %s797_s0 = inlined_call_operand.hbm [shape: f32[8,128], index: 0, kind: input, shape index: {}]   ;;  %s798_s1 = inlined_call_operand.hbm [shape: f32[3,128], index: 1, kind: input, shape index: {}]   ;;  %s799_s2 = inlined_call_operand.hbm [shape: f32[128,128], index: 2, kind: input, shape index: {}]   ;;  %s800_s3 = inlined_call_operand.hbm [shape: f32[128,128], index: 3, kind: input, shape index: {}]   ;;  %s801_s4 = inlined_call_operand.hbm [shape: f32[128,128], index: 4, kind: input, shape index: {}]   ;;  %s802_s5 = inlined_call_operand.hbm [shape: f32[8,128], index: 5, kind: output, shape index: {}]  }
   0x1   :  { %11 = vsyncpa [#allocation6], 0 }
   0x2   :  { %12 = vsyncpa [#allocation9], 0 }
   0x3   :  { %13 = vsyncpa [#allocation4], 0  ;;  %s676_s18 = smov [#allocation5]  }
   0x4   :  { %s30_s19 = sshll.u32 %s676_s18, 4  ;;  %s31_s19 = int_to_ptr.vmem [resolvable:$true] %s30_s19 }
   0x5   :  { %s556_s20 = scalar_lea.vmem %s31_s19, 64  ;;  %p561_p1 = scmp.lt.s32.totalorder %s31_s19, %s31_s19 }
   0x6   :  { %p557_p0 = scmp.ne.s32.totalorder %s31_s19, %s556_s20  ;;  %p562_p2 = scmp.lt.s32.totalorder %s556_s20, %s556_s20 }
   0x8   :  { %p563_p3 = por %p562_p2, %p561_p1 }
   0xa   :  { %p564_p4 = pnand %p563_p3, %p557_p0 }
   0xc   :  { %567 = shalt.err (!%p564_p4)
}
   0xd   :  { %33 = dma.hbm_to_vmem [thread:$0]  %s798_s1, 64, %s31_s19, [#allocation6]  }
   0xe   :  { %s677_s23 = smov [#allocation8]   ;;  %s678_s25 = smov [#allocation2]  }
   0xf   :  { %s51_s24 = sshll.u32 %s677_s23, 4  ;;  %s20_s26 = sshll.u32 %s678_s25, 4  ;;  %s52_s24 = int_to_ptr.vmem [resolvable:$true] %s51_s24  ;;  %s21_s26 = int_to_ptr.vmem [resolvable:$true] %s20_s26 }
  0x10   :  { %s576_s27 = scalar_lea.vmem %s52_s24, 2048  ;;  %p581_p6 = scmp.lt.s32.totalorder %s52_s24, %s52_s24 }
  0x11   :  { %p577_p5 = scmp.ne.s32.totalorder %s52_s24, %s576_s27  ;;  %p582_p7 = scmp.lt.s32.totalorder %s576_s27, %s576_s27 }
  0x13   :  { %p583_p8 = por %p582_p7, %p581_p6 }
  0x15   :  { %p584_p9 = pnand %p583_p8, %p577_p5 }
  0x17   :  { %587 = shalt.err (!%p584_p9)
}
  0x18   :  { %s679_s28 = smov 128   ;;  %s680_s29 = smov 8  }
  0x19   :  { %57 = dma.hbm_to_vmem [thread:$0]  %s800_s3, 2048, %s52_s24, [#allocation9], %s679_s28, %s679_s28, %s680_s29  }
  0x1a   :  { %s596_s1 = scalar_lea.vmem %s21_s26, 128  ;;  %p601_p11 = scmp.lt.s32.totalorder %s21_s26, %s21_s26 }
  0x1b   :  { %p597_p10 = scmp.ne.s32.totalorder %s21_s26, %s596_s1  ;;  %p602_p12 = scmp.lt.s32.totalorder %s596_s1, %s596_s1 }
  0x1d   :  { %p603_p13 = por %p602_p12, %p601_p11 }
  0x1f   :  { %p604_p0 = pnand %p603_p13, %p597_p10 }
  0x21   :  { %607 = shalt.err (!%p604_p0)
}
  0x22   :  { %23 = dma.hbm_to_vmem [thread:$0]  %s797_s0, 128, %s21_s26, [#allocation3]  }
  0x23   :  { %s681_s9 = smov [#allocation7]   ;;  %s682_s11 = smov [#allocation10]  }
  0x24   :  { %s39_s10 = sshll.u32 %s681_s9, 4  ;;  %s63_s12 = sshll.u32 %s682_s11, 4  ;;  %s40_s10 = int_to_ptr.vmem [resolvable:$true] %s39_s10  ;;  %s64_s12 = int_to_ptr.vmem [resolvable:$true] %s63_s12 }
  0x25   :  { %s616_s13 = scalar_lea.vmem %s40_s10, 2048  ;;  %p621_p2 = scmp.lt.s32.totalorder %s40_s10, %s40_s10 }
  0x26   :  { %p617_p1 = scmp.ne.s32.totalorder %s40_s10, %s616_s13  ;;  %p622_p3 = scmp.lt.s32.totalorder %s616_s13, %s616_s13 }
  0x28   :  { %p623_p4 = por %p622_p3, %p621_p2 }
  0x2a   :  { %p624_p5 = pnand %p623_p4, %p617_p1 }
  0x2c   :  { %627 = shalt.err (!%p624_p5)
}
  0x2d   :  { %45 = dma.hbm_to_vmem [thread:$0]  %s799_s2, 2048, %s40_s10, [#allocation6], %s679_s28, %s679_s28, %s680_s29  }
  0x2e   :  { %s636_s0 = scalar_lea.vmem %s64_s12, 2048  ;;  %p641_p7 = scmp.lt.s32.totalorder %s64_s12, %s64_s12 }
  0x2f   :  { %p637_p6 = scmp.ne.s32.totalorder %s64_s12, %s636_s0  ;;  %p642_p8 = scmp.lt.s32.totalorder %s636_s0, %s636_s0 }
  0x31   :  { %p643_p9 = por %p642_p8, %p641_p7 }
  0x33   :  { %p644_p10 = pnand %p643_p9, %p637_p6 }
  0x35   :  { %647 = shalt.err (!%p644_p10)
}
  0x36   :  { %69 = dma.hbm_to_vmem [thread:$0]  %s801_s4, 2048, %s64_s12, [#allocation9], %s679_s28, %s679_s28, %s680_s29  }
  0x37   :  { %668 = dma.done.wait [#allocation3], 128  }
  0x38   :  { %669 = vsyncadd [#allocation3], 4294967168 }
  0x39   :  { %670 = dma.done.wait [#allocation6], 2112  }
  0x3a   :  { %671 = vsyncadd [#allocation6], 4294965184 }
  0x3b   :  { %672 = dma.done.wait [#allocation9], 4096  }
  0x3c   :  { %673 = vsyncadd [#allocation9], 4294963200  ;;  %v683_v0 = vmov 0.0   ;;  %vm684_vm0 = vmmov 0   ;;  %v101_v1 = vld [vmem:[#allocation7 + $0x78] sm:$0xff]  ;;  %v100_v2 = vld [vmem:[#allocation7 + $0x70] sm:$0xff] }
  0x3d   :  { %433 = vmatprep.subr.mxu0 %v683_v0  ;;  %465 = vmatprep.mubr.msk.f32.mxu0 %vm684_vm0, %v683_v0  ;;  %v99_v3 = vld [vmem:[#allocation7 + $0x68] sm:$0xff]  ;;  %v98_v4 = vld [vmem:[#allocation7 + $0x60] sm:$0xff]  ;;  %v193_v5 = vld [vmem:[#allocation8 + $0x78] sm:$0xff]  ;;  %s685_s2 = smov [#allocation11]  }
  0x3e   :  { %468 = vmatprep.subr.mxu1 %v683_v0  ;;  %500 = vmatprep.mubr.msk.f32.mxu1 %vm684_vm0, %v683_v0  ;;  %v97_v6 = vld [vmem:[#allocation7 + $0x58] sm:$0xff]  ;;  %v192_v7 = vld [vmem:[#allocation8 + $0x70] sm:$0xff]  ;;  %v191_v8 = vld [vmem:[#allocation8 + $0x68] sm:$0xff]  ;;  %s368_s4 = sshll.u32 %s685_s2, 4  ;;  %s369_s4 = int_to_ptr.vmem [resolvable:$true] %s368_s4 }
  0x3f   :  { %434 = vmatpush3.msra.mxu0 %v101_v1  ;;  %469 = vmatpush3.msra.mxu1 %v193_v5  ;;  %v96_v9 = vld [vmem:[#allocation7 + $0x50] sm:$0xff]  ;;  %v190_v10 = vld [vmem:[#allocation8 + $0x60] sm:$0xff]  ;;  %v95_v11 = vld [vmem:[#allocation7 + $0x48] sm:$0xff]  ;;  %s648_s17 = scalar_lea.vmem %s369_s4, 128  ;;  %p653_p12 = scmp.lt.s32.totalorder %s369_s4, %s369_s4 }
  0x40   :  { %435 = vmatprep.subr.mxu0 %v683_v0  ;;  %470 = vmatprep.subr.mxu1 %v683_v0  ;;  %v189_v12 = vld [vmem:[#allocation8 + $0x58] sm:$0xff]  ;;  %v94_v13 = vld [vmem:[#allocation7 + $0x40] sm:$0xff]  ;;  %v188_v14 = vld [vmem:[#allocation8 + $0x50] sm:$0xff]  ;;  %p649_p11 = scmp.ne.s32.totalorder %s369_s4, %s648_s17  ;;  %p654_p13 = scmp.lt.s32.totalorder %s648_s17, %s648_s17 }
  0x41   :  { %436 = vmatpush3.msra.mxu0 %v100_v2  ;;  %471 = vmatpush3.msra.mxu1 %v192_v7  ;;  %v93_v15 = vld [vmem:[#allocation7 + $0x38] sm:$0xff]  ;;  %v187_v16 = vld [vmem:[#allocation8 + $0x48] sm:$0xff]  ;;  %v92_v17 = vld [vmem:[#allocation7 + $0x30] sm:$0xff] }
  0x42   :  { %437 = vmatprep.subr.mxu0 %v683_v0  ;;  %472 = vmatprep.subr.mxu1 %v683_v0  ;;  %v186_v18 = vld [vmem:[#allocation8 + $0x40] sm:$0xff]  ;;  %v91_v19 = vld [vmem:[#allocation7 + $0x28] sm:$0xff]  ;;  %v185_v20 = vld [vmem:[#allocation8 + $0x38] sm:$0xff]  ;;  %p655_p0 = por %p654_p13, %p653_p12 }
  0x43   :  { %438 = vmatpush3.msra.mxu0 %v99_v3  ;;  %473 = vmatpush3.msra.mxu1 %v191_v8  ;;  %v90_v21 = vld [vmem:[#allocation7 + $0x20] sm:$0xff]  ;;  %v184_v22 = vld [vmem:[#allocation8 + $0x30] sm:$0xff]  ;;  %v89_v23 = vld [vmem:[#allocation7 + $0x18] sm:$0xff] }
  0x44   :  { %439 = vmatprep.subr.mxu0 %v683_v0  ;;  %474 = vmatprep.subr.mxu1 %v683_v0  ;;  %v183_v24 = vld [vmem:[#allocation8 + $0x28] sm:$0xff]  ;;  %v88_v25 = vld [vmem:[#allocation7 + $0x10] sm:$0xff]  ;;  %v182_v26 = vld [vmem:[#allocation8 + $0x20] sm:$0xff]  ;;  %p656_p1 = pnand %p655_p0, %p649_p11 }
  0x45   :  { %440 = vmatpush3.msra.mxu0 %v98_v4  ;;  %475 = vmatpush3.msra.mxu1 %v190_v10  ;;  %v87_v27 = vld [vmem:[#allocation7 + $0x8] sm:$0xff]  ;;  %v181_v28 = vld [vmem:[#allocation8 + $0x18] sm:$0xff]  ;;  %v86_v29 = vld [vmem:[#allocation7] sm:$0xff] }
  0x46   :  { %441 = vmatprep.subr.mxu0 %v683_v0  ;;  %476 = vmatprep.subr.mxu1 %v683_v0  ;;  %v85_v30 = vld [vmem:[#allocation2] sm:$0xff]  ;;  %v179_v32 = vld [vmem:[#allocation8 + $0x8] sm:$0xff]  ;;  %v178_v33 = vld [vmem:[#allocation8] sm:$0xff] }
  0x47   :  { %442 = vmatpush3.msra.mxu0 %v97_v6  ;;  %477 = vmatpush3.msra.mxu1 %v189_v12  ;;  %v180_v31 = vld [vmem:[#allocation8 + $0x10] sm:$0xff]  ;;  %v285_v34 = vld [vmem:[#allocation10 + $0x78] sm:$0xff]  ;;  %v283_v36 = vld [vmem:[#allocation10 + $0x68] sm:$0xff] }
  0x48   :  { %443 = vmatprep.subr.mxu0 %v683_v0  ;;  %478 = vmatprep.subr.mxu1 %v683_v0  ;;  %v284_v35 = vld [vmem:[#allocation10 + $0x70] sm:$0xff]  ;;  %v282_v37 = vld [vmem:[#allocation10 + $0x60] sm:$0xff]  ;;  %v281_v38 = vld [vmem:[#allocation10 + $0x58] sm:$0xff] }
  0x49   :  { %444 = vmatpush3.msra.mxu0 %v96_v9  ;;  %479 = vmatpush3.msra.mxu1 %v188_v14  ;;  %v280_v39 = vld [vmem:[#allocation10 + $0x50] sm:$0xff]  ;;  %v279_v40 = vld [vmem:[#allocation10 + $0x48] sm:$0xff]  ;;  %v278_v41 = vld [vmem:[#allocation10 + $0x40] sm:$0xff] }
  0x4a   :  { %445 = vmatprep.subr.mxu0 %v683_v0  ;;  %480 = vmatprep.subr.mxu1 %v683_v0  ;;  %v277_v42 = vld [vmem:[#allocation10 + $0x38] sm:$0xff]  ;;  %v276_v43 = vld [vmem:[#allocation10 + $0x30] sm:$0xff]  ;;  %v275_v44 = vld [vmem:[#allocation10 + $0x28] sm:$0xff] }
  0x4b   :  { %446 = vmatpush3.msra.mxu0 %v95_v11  ;;  %481 = vmatpush3.msra.mxu1 %v187_v16  ;;  %v274_v45 = vld [vmem:[#allocation10 + $0x20] sm:$0xff]  ;;  %v273_v46 = vld [vmem:[#allocation10 + $0x18] sm:$0xff]  ;;  %v272_v52 = vld [vmem:[#allocation10 + $0x10] sm:$0xff] }
  0x4c   :  { %447 = vmatprep.subr.mxu0 %v683_v0  ;;  %482 = vmatprep.subr.mxu1 %v683_v0  ;;  %v379_v47 = vld [vmem:[#allocation5] ss:$0 sm:$0xff]  ;;  %v271_v53 = vld [vmem:[#allocation10 + $0x8] sm:$0xff]  ;;  %v270_v54 = vld [vmem:[#allocation10] sm:$0xff] }
  0x4d   :  { %448 = vmatpush3.msra.mxu0 %v94_v13  ;;  %483 = vmatpush3.msra.mxu1 %v186_v18  ;;  %v380_v55 = vld [vmem:[#allocation5 + $0x1] ss:$0 sm:$0xff]  ;;  %v381_v60 = vld [vmem:[#allocation5 + $0x2] ss:$0 sm:$0xff] }
  0x4e   :  { %449 = vmatprep.subr.mxu0 %v683_v0  ;;  %484 = vmatprep.subr.mxu1 %v683_v0 }
  0x4f   :  { %450 = vmatpush3.msra.mxu0 %v93_v15  ;;  %485 = vmatpush3.msra.mxu1 %v185_v20 }
  0x50   :  { %451 = vmatprep.subr.mxu0 %v683_v0  ;;  %486 = vmatprep.subr.mxu1 %v683_v0 }
  0x51   :  { %452 = vmatpush3.msra.mxu0 %v92_v17  ;;  %487 = vmatpush3.msra.mxu1 %v184_v22 }
  0x52   :  { %453 = vmatprep.subr.mxu0 %v683_v0  ;;  %488 = vmatprep.subr.mxu1 %v683_v0 }
  0x53   :  { %454 = vmatpush3.msra.mxu0 %v91_v19  ;;  %489 = vmatpush3.msra.mxu1 %v183_v24 }
  0x54   :  { %455 = vmatprep.subr.mxu0 %v683_v0  ;;  %490 = vmatprep.subr.mxu1 %v683_v0 }
  0x55   :  { %456 = vmatpush3.msra.mxu0 %v90_v21  ;;  %491 = vmatpush3.msra.mxu1 %v182_v26 }
  0x56   :  { %457 = vmatprep.subr.mxu0 %v683_v0  ;;  %492 = vmatprep.subr.mxu1 %v683_v0 }
  0x57   :  { %458 = vmatpush3.msra.mxu0 %v89_v23  ;;  %493 = vmatpush3.msra.mxu1 %v181_v28 }
  0x58   :  { %459 = vmatprep.subr.mxu0 %v683_v0  ;;  %494 = vmatprep.subr.mxu1 %v683_v0 }
  0x59   :  { %460 = vmatpush3.msra.mxu0 %v88_v25  ;;  %495 = vmatpush3.msra.mxu1 %v180_v31 }
  0x5a   :  { %461 = vmatprep.subr.mxu0 %v683_v0  ;;  %496 = vmatprep.subr.mxu1 %v683_v0 }
  0x5b   :  { %462 = vmatpush3.msra.mxu0 %v87_v27  ;;  %497 = vmatpush3.msra.mxu1 %v179_v32 }
  0x5c   :  { %463 = vmatprep.subr.mxu0 %v683_v0  ;;  %498 = vmatprep.subr.mxu1 %v683_v0 }
  0x5d   :  { %464 = vmatpush3.msra.mxu0 %v86_v29  ;;  %499 = vmatpush3.msra.mxu1 %v178_v33 }
  0x5e   :  { %466 = vmatmul.mubr.f32.vlgmr.msra.gmra.mxu0 %v85_v30  ;;  %503 = vmatprep.subr.mxu0 %v683_v0 }
  0x5f   :  { %535 = vmatprep.mubr.msk.f32.mxu0 %vm684_vm0, %v683_v0  ;;  %504 = vmatpush3.msra.mxu0 %v285_v34 }
  0x60   :  { %505 = vmatprep.subr.mxu0 %v683_v0 }
  0x61   :  { %506 = vmatpush3.msra.mxu0 %v284_v35 }
  0x62   :  { %507 = vmatprep.subr.mxu0 %v683_v0 }
  0x63   :  { %508 = vmatpush3.msra.mxu0 %v283_v36 }
  0x64   :  { %509 = vmatprep.subr.mxu0 %v683_v0 }
  0x65   :  { %510 = vmatpush3.msra.mxu0 %v282_v37 }
  0x66   :  { %511 = vmatprep.subr.mxu0 %v683_v0 }
  0x67   :  { %512 = vmatpush3.msra.mxu0 %v281_v38 }
  0x68   :  { %513 = vmatprep.subr.mxu0 %v683_v0 }
  0x69   :  { %514 = vmatpush3.msra.mxu0 %v280_v39 }
  0x6a   :  { %515 = vmatprep.subr.mxu0 %v683_v0 }
  0x6b   :  { %516 = vmatpush3.msra.mxu0 %v279_v40 }
  0x6c   :  { %517 = vmatprep.subr.mxu0 %v683_v0 }
  0x6d   :  { %518 = vmatpush3.msra.mxu0 %v278_v41 }
  0x6e   :  { %519 = vmatprep.subr.mxu0 %v683_v0 }
  0x6f   :  { %520 = vmatpush3.msra.mxu0 %v277_v42 }
  0x70   :  { %521 = vmatprep.subr.mxu0 %v683_v0 }
  0x71   :  { %522 = vmatpush3.msra.mxu0 %v276_v43 }
  0x72   :  { %523 = vmatprep.subr.mxu0 %v683_v0 }
  0x73   :  { %524 = vmatpush3.msra.mxu0 %v275_v44 }
  0x74   :  { %525 = vmatprep.subr.mxu0 %v683_v0 }
  0x75   :  { %526 = vmatpush3.msra.mxu0 %v274_v45 }
  0x76   :  { %527 = vmatprep.subr.mxu0 %v683_v0 }
  0x77   :  { %528 = vmatpush3.msra.mxu0 %v273_v46 }
  0x78   :  { %529 = vmatprep.subr.mxu0 %v683_v0 }
  0x79   :  { %530 = vmatpush3.msra.mxu0 %v272_v52 }
  0x7a   :  { %531 = vmatprep.subr.mxu0 %v683_v0 }
  0x7b   :  { %532 = vmatpush3.msra.mxu0 %v271_v53 }
  0x7c   :  { %533 = vmatprep.subr.mxu0 %v683_v0 }
  0x7d   :  { %534 = vmatpush3.msra.mxu0 %v270_v54 }
 0x11e   :  { %v173_v48 = vpop.f32.mrf.mxu0 }
 0x11f   :  { %v174_v49 = vadd.f32 %v379_v47, %v173_v48 }
 0x120   :  { %v467_v50 = vpop.f32.mrf.mxu0 }
 0x121   :  { %v177_v51 = vmax.f32 %v174_v49, 0.0 }
 0x123   :  { %501 = vmatmul.mubr.f32.vlgmr.msra.gmra.mxu1 %v177_v51 }
 0x1e3   :  { %v265_v56 = vpop.f32.mrf.mxu1 }
 0x1e4   :  { %v266_v57 = vadd.f32 %v380_v55, %v265_v56 }
 0x1e5   :  { %v502_v58 = vpop.f32.mrf.mxu1 }
 0x1e6   :  { %v269_v59 = vmax.f32 %v266_v57, 0.0 }
 0x1e8   :  { %536 = vmatmul.mubr.f32.vlgmr.msra.gmra.mxu0 %v269_v59 }
 0x2a8   :  { %v357_v61 = vpop.f32.mrf.mxu0 }
 0x2a9   :  { %v358_v62 = vadd.f32 %v381_v60, %v357_v61 }
 0x2aa   :  { %v537_v63 = vpop.f32.mrf.mxu0 }
 0x2ab   :  { %361 = vst [vmem:[#allocation11] sm:$0xff] %v358_v62 }
 0x2ac   :  { %659 = shalt.err (!%p656_p1)
}
 0x2ad   :  { %371 = dma.vmem_to_hbm [thread:$0]  %s369_s4, 128, %s802_s5, [#allocation4]  }
 0x2ae   :  { %674 = dma.done.wait [#allocation4], 128  }
 0x2af   :  { %675 = vsyncadd [#allocation4], 4294967168 }
 0x2b0   :  { %375 = vsyncpa [#allocation3], 1 }
 0x2b1   :  { %376 = vsyncpa [#allocation6], 1 }
 0x2b2   :  { %377 = vsyncpa [#allocation9], 1 }
 0x2b3   :  { %378 = vsyncpa [#allocation4], 1 }

</bundles_post_ra>
